<compile_context>
chip_gen: v7x
topology: tpu7x:2x2x1
jax: 0.10.0
libtpu: 0.0.40
codegen_flags: <defaults>
</compile_context>

<pallas_src>
import jax
import jax.numpy as jnp
from jax.experimental import pallas as pl
from jax.experimental.pallas import tpu as pltpu

_LANE_CANDIDATES = (4096, 2048, 1024, 512, 256, 128)
_TARGET_BLOCK_BYTES = 1 << 20   # ~1 MiB blocks: on the measured HBM-roofline plateau;
                                # (in + out) x 2 pipeline buffers = 4 MiB, well under the
                                # default scoped-VMEM limit on v5e / v6e / v7x.
_SINGLE_BLOCK_BYTES = 1 << 20   # arrays at/below this skip the grid entirely.


def _half_exp_kernel(x_ref, o_ref):
    # 0.5 * exp(x): exp runs on the EUP slot, the scale on the VPU slot — both are
    # free filler under DMA in this memory-bound regime.
    o_ref[...] = 0.5 * jnp.exp(x_ref[...])


def half_exp(x: jax.Array) -> jax.Array:
    """Pallas TPU implementation of HalfExp.forward: 0.5 * exp(x)."""
    orig_shape = x.shape
    dtype = x.dtype
    itemsize = x.dtype.itemsize
    # dtype-dependent minimum sublane tiling (f32: 8, bf16: 16, int8/fp8: 32).
    min_sublane = {4: 8, 2: 16, 1: 32}.get(itemsize, 8)

    flat = x.reshape(-1)
    n = flat.shape[0]

    # Widest lane dimension (multiple of 128) that divides n exactly -> no pad copy.
    lane = next((w for w in _LANE_CANDIDATES if n % w == 0), None)
    if lane is None:
        # Rare ragged case (total elements not a multiple of 128): a one-time pad is
        # unavoidable for a lane-dense layout. Never hit for typical NCHW activations.
        pad = (-n) % (min_sublane * 128)
        flat = jnp.pad(flat, (0, pad))
        lane = 128
    rows = flat.shape[0] // lane
    x2d = flat.reshape(rows, lane)

    total_bytes = rows * lane * itemsize
    if total_bytes <= _SINGLE_BLOCK_BYTES:
        # Tiny/small input: one full-array block, no grid loop, no per-step overhead.
        out2d = pl.pallas_call(
            _half_exp_kernel,
            out_shape=jax.ShapeDtypeStruct((rows, lane), dtype),
        )(x2d)
    else:
        # Large input: ~1 MiB lane-dense blocks, cdiv grid (Pallas masks the ragged
        # last block), "parallel" so megacore / v7x's two TensorCores shard the grid.
        rows_per_block = _TARGET_BLOCK_BYTES // (lane * itemsize)
        tile_rows = max(min_sublane, (rows_per_block // min_sublane) * min_sublane)
        tile_rows = min(tile_rows, rows)
        grid = (pl.cdiv(rows, tile_rows),)
        out2d = pl.pallas_call(
            _half_exp_kernel,
            out_shape=jax.ShapeDtypeStruct((rows, lane), dtype),
            grid_spec=pltpu.PrefetchScalarGridSpec(
                num_scalar_prefetch=0,
                grid=grid,
                in_specs=[pl.BlockSpec((tile_rows, lane), lambda i: (i, 0))],
                out_specs=pl.BlockSpec((tile_rows, lane), lambda i: (i, 0)),
            ),
            compiler_params=pltpu.CompilerParams(
                dimension_semantics=("parallel",),
            ),
        )(x2d)

    out_flat = out2d.reshape(-1)
    if out_flat.shape[0] != n:   # only possible in the rare padded fallback
        out_flat = out_flat[:n]
    return out_flat.reshape(orig_shape)


if __name__ == "__main__":
    key = jax.random.PRNGKey(0)

    # Small NCHW activation consistent with the DESIRE module usage: batch=2, C=4, H=W=16.
    x = jax.random.normal(key, (2, 4, 16, 16), dtype=jnp.float32)
    out = jax.block_until_ready(half_exp(x))
    ref = 0.5 * jnp.exp(x)
    assert out.shape == x.shape and out.dtype == x.dtype
    assert jnp.allclose(out, ref, rtol=1e-6, atol=1e-6)

    # Larger input to also exercise the tiled (grid) path.
    k2 = jax.random.split(key)[0]
    x_big = jax.random.normal(k2, (8, 16, 64, 64), dtype=jnp.float32)
    out_big = jax.block_until_ready(half_exp(x_big))
    ref_big = 0.5 * jnp.exp(x_big)
    assert out_big.shape == x_big.shape and out_big.dtype == x_big.dtype
    assert jnp.allclose(out_big, ref_big, rtol=1e-6, atol=1e-6)

    print("KERNEL_OK")
</pallas_src>

<mosaic_0001>
module attributes {stable_mosaic.version = 11 : i64} {
  func.func @_half_exp_kernel(%arg0: memref<1x2048xf32, #tpu.memory_space<vmem>>, %arg1: memref<1x2048xf32, #tpu.memory_space<vmem>>) attributes {dimension_semantics = [], scalar_prefetch = 0 : i64, scratch_operands = 0 : i64, tpu.core_type = #tpu.core_type<tc>} {
    %c0 = arith.constant 0 : index
    %c0_0 = arith.constant 0 : index
    %0 = vector.load %arg0[%c0, %c0_0] : memref<1x2048xf32, #tpu.memory_space<vmem>>, vector<1x2048xf32>
    %1 = math.exp %0 : vector<1x2048xf32>
    %cst = arith.constant 5.000000e-01 : f32
    %2 = vector.broadcast %cst : f32 to vector<1x2048xf32>
    %3 = arith.mulf %2, %1 : vector<1x2048xf32>
    %c0_1 = arith.constant 0 : index
    %c0_2 = arith.constant 0 : index
    %4 = vector.load %arg1[%c0_1, %c0_2] : memref<1x2048xf32, #tpu.memory_space<vmem>>, vector<1x2048xf32>
    tpu.vector_store %arg1[%c0_1, %c0_2], %3 {strides = array<i32>} : memref<1x2048xf32, #tpu.memory_space<vmem>>, vector<1x2048xf32>,
    return
  }
}

</mosaic_0001>

<bundles_post_ra>
// kernel: tpu_custom_call.1
= control target key start
LH: loop header
LB: loop body
LE: loop exit
PB: predicated region body
PF: predicated region fallthrough
CT: control target
= control target key end

     0   :  { %6 = vsyncpa [#allocation3], 0  ;;  %s136_s0 = inlined_call_operand.hbm [shape: f32[1,2048], index: 0, kind: input, shape index: {}]   ;;  %s137_s1 = inlined_call_operand.hbm [shape: f32[1,2048], index: 1, kind: output, shape index: {}]  }
   0x1   :  { %7 = vsyncpa [#allocation4], 0  ;;  %s100_s6 = smov [#allocation2]   ;;  %s52_s10 = scalar_lea.hbm %s136_s0, 256 }
   0x2   :  { %s14_s7 = sshll.u32 %s100_s6, 4  ;;  %p53_p0 = scmp.ne.s32.totalorder %s136_s0, %s52_s10  ;;  %s15_s7 = int_to_ptr.vmem [resolvable:$true] %s14_s7 }
   0x3   :  { %p56_p1 = scmp.lt.u32.totalorder %s52_s10, %s136_s0 }
   0x5   :  { %p58_p2 = pnand %p56_p1, %p53_p0 }
   0x7   :  { %61 = shalt.err (!%p58_p2)
}
   0x8   :  { %s62_s15 = scalar_lea.vmem %s15_s7, 256  ;;  %p67_p4 = scmp.lt.s32.totalorder %s15_s7, %s15_s7 }
   0x9   :  { %p63_p3 = scmp.ne.s32.totalorder %s15_s7, %s62_s15  ;;  %p68_p5 = scmp.lt.s32.totalorder %s62_s15, %s62_s15 }
   0xb   :  { %p69_p6 = por %p68_p5, %p67_p4 }
   0xd   :  { %p70_p7 = pnand %p69_p6, %p63_p3 }
   0xf   :  { %73 = shalt.err (!%p70_p7)
}
  0x10   :  { %17 = dma.hbm_to_vmem [thread:$0]  %s136_s0, 256, %s15_s7, [#allocation3]  }
  0x11   :  { %96 = dma.done.wait [#allocation3], 256  }
  0x12   :  { %97 = vsyncadd [#allocation3], 4294967040  ;;  %v21_v0 = vld [vmem:[#allocation2] sm:$0xff]  ;;  %v22_v1 = vld [vmem:[#allocation2 + $0x8] sm:$0xff]  ;;  %s101_s18 = smov [#allocation5]  }
  0x13   :  { %v23_v2 = vmul.f32 1.442695, %v21_v0  ;;  %v25_v3 = vmul.f32 1.442695, %v22_v1  ;;  %s37_s19 = sshll.u32 %s101_s18, 4  ;;  %s38_s19 = int_to_ptr.vmem [resolvable:$true] %s37_s19 }
  0x14   :  { %s74_s20 = scalar_lea.vmem %s38_s19, 256  ;;  %p79_p9 = scmp.lt.s32.totalorder %s38_s19, %s38_s19 }
  0x15   :  { %48 = vpow2.f32 %v23_v2  ;;  %p75_p8 = scmp.ne.s32.totalorder %s38_s19, %s74_s20  ;;  %p80_p10 = scmp.lt.s32.totalorder %s74_s20, %s74_s20 }
  0x16   :  { %50 = vpow2.f32 %v25_v3 }
  0x17   :  { %p81_p11 = por %p80_p10, %p79_p9 }
  0x19   :  { %p82_p12 = pnand %p81_p11, %p75_p8 }
  0x1f   :  { %v49_v4 = vpop.eup %48 }
  0x20   :  { %v51_v5 = vpop.eup %50  ;;  %v27_v6 = vmul.f32 0.5, %v49_v4 }
  0x21   :  { %v28_v7 = vmul.f32 0.5, %v51_v5 }
  0x22   :  { %29 = vst [vmem:[#allocation5] sm:$0xff] %v27_v6 }
  0x23   :  { %30 = vst [vmem:[#allocation5 + $0x8] sm:$0xff] %v28_v7 }
  0x24   :  { %85 = shalt.err (!%p82_p12)
}
  0x25   :  { %s86_s22 = scalar_lea.hbm %s137_s1, 256 }
  0x26   :  { %p87_p13 = scmp.ne.s32.totalorder %s137_s1, %s86_s22  ;;  %p90_p0 = scmp.lt.u32.totalorder %s86_s22, %s137_s1 }
  0x28   :  { %p92_p1 = pnand %p90_p0, %p87_p13 }
  0x2a   :  { %95 = shalt.err (!%p92_p1)
}
  0x2b   :  { %40 = dma.vmem_to_hbm [thread:$0]  %s38_s19, 256, %s137_s1, [#allocation4]  }
  0x2c   :  { %98 = dma.done.wait [#allocation4], 256  }
  0x2d   :  { %99 = vsyncadd [#allocation4], 4294967040 }
  0x2e   :  { %44 = vsyncpa [#allocation3], 1 }
  0x2f   :  { %45 = vsyncpa [#allocation4], 1 }

</bundles_post_ra>
